<compile_context>
chip_gen: v5e
topology: v5e:2x2
jax: 0.10.0
libtpu: 0.0.40
codegen_flags: <defaults>
</compile_context>

<pallas_src>
import functools
import math

import jax
import jax.numpy as jnp
from jax.experimental import pallas as pl
from jax.experimental.pallas import tpu as pltpu


def _round_up(x: int, m: int) -> int:
    return ((x + m - 1) // m) * m


def _cdiv(a: int, b: int) -> int:
    return -(-a // b)


def _vmem_capacity_bytes() -> int:
    """Physical VMEM per TensorCore (128 MiB on v5e/v6e, 64 MiB on v7x)."""
    try:
        info_fn = getattr(pltpu, "get_tpu_info", None)
        if info_fn is not None:
            cap = getattr(info_fn(), "vmem_capacity_bytes", None)
            if cap:
                return int(cap)
    except Exception:
        pass
    try:
        kind = jax.devices()[0].device_kind.lower()
        if "7" in kind:           # TPU7x: 64 MiB per TensorCore
            return 64 * 1024 * 1024
    except Exception:
        pass
    return 128 * 1024 * 1024


# ----------------------------------------------------------------------------
# Kernel
# ----------------------------------------------------------------------------
def _ff_kernel(x_ref, w1_ref, w2_ref, beff_ref, o_ref, acc_ref):
    # x_ref   : (tm, in_p)   row tile (resident across the k axis)
    # w1_ref  : (in_p, tk)   k-th slice of W1
    # w2_ref  : (tk, in_p)   k-th slice of W2
    # beff_ref: (1, in_p)    effective bias  b2 + b1 @ W2  (f32)
    # o_ref   : (tm, in_p)   output row tile
    # acc_ref : (tm, in_p)   float32 accumulator scratch
    k = pl.program_id(1)

    @pl.when(k == 0)
    def _init():
        # Effective bias is folded into the accumulator exactly once.
        acc_ref[...] = jnp.broadcast_to(
            beff_ref[...].astype(jnp.float32), acc_ref.shape)

    # h_k = x @ W1[:, k-slice]  -> (tm, tk), f32 accumulation on the MXU.
    h = jnp.dot(x_ref[...], w1_ref[...], preferred_element_type=jnp.float32)

    # acc += h_k @ W2[k-slice, :]; cast h to the weight dtype so bf16 weights
    # run at MXU peak while the accumulation stays f32.
    acc_ref[...] += jnp.dot(h.astype(w2_ref.dtype), w2_ref[...],
                            preferred_element_type=jnp.float32)

    @pl.when(k == pl.num_programs(1) - 1)
    def _finalize():
        o_ref[...] = acc_ref[...].astype(o_ref.dtype)


# ----------------------------------------------------------------------------
# Tile selection helpers (all static Python ints)
# ----------------------------------------------------------------------------
def _auto_tm(M: int, target: int) -> int:
    """Balanced, padding-aware row tile (256-granular when cheap, else 16)."""
    if M <= 256:
        return max(16, _round_up(M, 16))
    n = _cdiv(M, target)            # number of row tiles at the target size
    bal = _cdiv(M, n)               # balanced rows per tile
    tm = _round_up(bal, 256)
    if n * tm - M > max(64, M // 16):   # > ~6% padded rows -> snug 16-granular
        tm = _round_up(bal, 16)
    return tm


def _auto_tk(ff_p: int, target: int) -> int:
    """Largest multiple of 128 that divides ff_p and is <= target.

    Keeps ff padding at <=128 columns and the W1 column-slice DMA chunks
    reasonably long (target 512 -> >=1-2 KiB per strided descriptor)."""
    target = max(128, _round_up(target, 128))
    q = ff_p // 128
    best = 128
    for mult in range(1, q + 1):
        cand = 128 * mult
        if cand > target:
            break
        if q % mult == 0:
            best = cand
    return best


# ----------------------------------------------------------------------------
# Wrapper
# ----------------------------------------------------------------------------
@functools.partial(jax.jit, static_argnames=("tm", "tk"))
def ff_layer(x, w1, b1, w2, b2, *, tm=None, tk=None):
    """x: (B, S, in_dim) -> (B, S, in_dim);  y = (x @ w1 + b1) @ w2 + b2.

    Weights are already transposed relative to nn.Linear (y = x @ W + b).
    tm / tk are optional overrides (mostly for testing); by default they are
    derived from the shapes and the TPU generation's VMEM capacity.
    """
    B, S, in_dim = x.shape
    ff_dim = w1.shape[1]
    M = B * S

    x_it = jnp.dtype(x.dtype).itemsize
    w_it = jnp.dtype(w1.dtype).itemsize
    o_it = x_it

    # ---- feature padding: lane-dense (128) only --------------------------
    in_p = _round_up(in_dim, 128)
    ff_p = _round_up(ff_dim, 128)

    # ---- VMEM budget for this generation ----------------------------------
    cap = _vmem_capacity_bytes()            # 64 MiB (v7x) / 128 MiB (v5e/v6e)
    hard_cap = int(cap * 0.78)              # scoped-vmem ceiling we request
    fit_budget = int(cap * 0.68)            # tile-selection budget (headroom)
    overhead = 2 * 1024 * 1024              # Mosaic internal scratch, sems, ...

    def row_bytes(tm_, kdim):
        # Per-row-tile working set: x tile + out tile (double-buffered),
        # f32 accumulator, the (tm, kdim) f32 intermediate + its cast copy.
        return (2 * tm_ * in_p * x_it + 2 * tm_ * in_p * o_it
                + tm_ * in_p * 4 + tm_ * kdim * 4 + tm_ * kdim * w_it
                + 2 * in_p * 4)

    def weight_bytes(kdim):
        # W1 slice + W2 slice, double-buffered by the pipeline.
        return 2 * (in_p * kdim + kdim * in_p) * w_it

    # ---- row tile ----------------------------------------------------------
    auto_tm = tm is None
    if auto_tm:
        tm = _auto_tm(M, 1024)     # AI w.r.t. streamed weights == tm, so go big
    else:
        tm = max(16, _round_up(min(tm, _round_up(M, 16)), 16))

    # ---- ff tile: weight-resident fast path vs streamed K reduction --------
    forced_stream = (tk is not None) and (_round_up(tk, 128) < ff_p)
    resident = False
    if not forced_stream:
        # Weight-resident: single k step; W1/W2 block indices are constant over
        # the whole grid so Pallas DMAs them exactly once.
        cand_tms = [tm] if not auto_tm else sorted(
            {tm} | {c for c in (512, 256) if c < tm}, reverse=True)
        for cand in cand_tms:
            if weight_bytes(ff_p) + row_bytes(cand, ff_p) + overhead <= fit_budget:
                tm, resident = cand, True
                break

    if resident:
        tk = ff_p
    else:
        if tk is None:
            tk = _auto_tk(ff_p, 512)
        else:
            tk = max(128, min(_round_up(tk, 128), ff_p))
            ff_p = _round_up(ff_p, tk)
        # Shrink the row tile if even the streamed working set is over budget.
        while (weight_bytes(tk) + row_bytes(tm, tk) + overhead > fit_budget
               and tm > 256):
            tm = max(256, _round_up(tm // 2, 16))

    # ---- megacore: give v7x's two TensorCores at least one row tile each ---
    if auto_tm and resident and _round_up(M, tm) // tm < 2 and M >= 256:
        tm = _round_up(_cdiv(M, 2), 16)

    M_p = _round_up(M, tm)
    n_row, n_k = M_p // tm, ff_p // tk

    footprint = weight_bytes(tk) + row_bytes(tm, tk) + overhead
    vmem_limit = int(min(hard_cap, max(32 * 1024 * 1024, int(1.15 * footprint))))

    # ---- pad operands (zero padding is exact for an affine layer) ----------
    x2d = jnp.pad(x.reshape(M, in_dim), ((0, M_p - M), (0, in_p - in_dim)))
    w1_p = jnp.pad(w1, ((0, in_p - in_dim), (0, ff_p - ff_dim)))
    w2_p = jnp.pad(w2, ((0, ff_p - ff_dim), (0, in_p - in_dim)))
    # Fold b1 into an effective output bias: y = (x @ W1) @ W2 + (b1 @ W2 + b2).
    bias_eff = (b2.astype(jnp.float32)
                + jnp.dot(b1.astype(jnp.float32), w2.astype(jnp.float32),
                          precision=jax.lax.Precision.HIGHEST))
    beff_p = jnp.pad(bias_eff, (0, in_p - in_dim)).reshape(1, in_p)

    # ---- cost estimate (weights re-streamed per row tile if not resident) --
    w_fetch = 1 if resident else n_row
    flops = 4 * M_p * in_p * ff_p
    bytes_accessed = (M_p * in_p * (x_it + o_it)
                      + w_fetch * 2 * in_p * ff_p * w_it
                      + in_p * 4)

    grid = (n_row, n_k)   # rows: parallel (megacore); ff contraction: arbitrary

    out = pl.pallas_call(
        _ff_kernel,
        out_shape=jax.ShapeDtypeStruct((M_p, in_p), x.dtype),
        grid_spec=pltpu.PrefetchScalarGridSpec(
            num_scalar_prefetch=0,
            grid=grid,
            in_specs=[
                pl.BlockSpec((tm, in_p), lambda i, k: (i, 0)),   # x row tile
                pl.BlockSpec((in_p, tk), lambda i, k: (0, k)),   # W1 k-slice
                pl.BlockSpec((tk, in_p), lambda i, k: (k, 0)),   # W2 k-slice
                pl.BlockSpec((1, in_p), lambda i, k: (0, 0)),    # folded bias
            ],
            out_specs=pl.BlockSpec((tm, in_p), lambda i, k: (i, 0)),
            scratch_shapes=[pltpu.VMEM((tm, in_p), jnp.float32)],
        ),
        compiler_params=pltpu.CompilerParams(
            dimension_semantics=("parallel", "arbitrary"),
            vmem_limit_bytes=vmem_limit),
        cost_estimate=pl.CostEstimate(
            flops=flops, transcendentals=0, bytes_accessed=bytes_accessed),
    )(x2d, w1_p, w2_p, beff_p)

    return out[:M, :in_dim].reshape(B, S, in_dim)


# ----------------------------------------------------------------------------
# Demo / self-test
# ----------------------------------------------------------------------------
def init_ff_params(key, in_dim, ff_dim, dtype=jnp.float32):
    """Mirror nn.Linear default init (uniform +/- 1/sqrt(fan_in)); weights are
    returned already transposed for y = x @ W."""
    k1, k2, k3, k4 = jax.random.split(key, 4)
    bound1 = 1.0 / math.sqrt(in_dim)
    bound2 = 1.0 / math.sqrt(ff_dim)
    w1 = jax.random.uniform(k1, (in_dim, ff_dim), dtype, -bound1, bound1)
    b1 = jax.random.uniform(k2, (ff_dim,), dtype, -bound1, bound1)
    w2 = jax.random.uniform(k3, (ff_dim, in_dim), dtype, -bound2, bound2)
    b2 = jax.random.uniform(k4, (in_dim,), dtype, -bound2, bound2)
    return w1, b1, w2, b2


def _reference(x, w1, b1, w2, b2):
    hp = jax.lax.Precision.HIGHEST
    f32 = jnp.float32
    xm = x.reshape(-1, x.shape[-1]).astype(f32)
    h = jnp.dot(xm, w1.astype(f32), precision=hp) + b1.astype(f32)
    y = jnp.dot(h, w2.astype(f32), precision=hp) + b2.astype(f32)
    return y.reshape(x.shape)


if __name__ == "__main__":
    key = jax.random.PRNGKey(0)

    # 1) small dims (<128 -> padding path), weight-resident, single row tile
    B, S, in_dim, ff_dim = 2, 8, 32, 64
    kx, kp, key = jax.random.split(key, 3)
    x = jax.random.normal(kx, (B, S, in_dim), jnp.float32)
    w1, b1, w2, b2 = init_ff_params(kp, in_dim, ff_dim)
    y = jax.block_until_ready(ff_layer(x, w1, b1, w2, b2))
    ref = _reference(x, w1, b1, w2, b2)
    assert jnp.allclose(y, ref, atol=1e-3, rtol=1e-3), "f32 mismatch (test 1)"

    # 2) ragged M, forced streamed-K path (multi row tiles, multi k steps)
    B2, S2, in2, ff2 = 3, 37, 96, 160
    kx2, kp2, key = jax.random.split(key, 3)
    x2 = jax.random.normal(kx2, (B2, S2, in2), jnp.float32)
    p2 = init_ff_params(kp2, in2, ff2)
    y2 = jax.block_until_ready(ff_layer(x2, *p2, tm=48, tk=128))
    ref2 = _reference(x2, *p2)
    assert jnp.allclose(y2, ref2, atol=1e-3, rtol=1e-3), "f32 mismatch (test 2)"

    # 3) auto-tiled path with >=2 row tiles on the weight-resident fast path
    B3, S3, in3, ff3 = 2, 520, 64, 96
    kx3, kp3, key = jax.random.split(key, 3)
    x3 = jax.random.normal(kx3, (B3, S3, in3), jnp.float32)
    p3 = init_ff_params(kp3, in3, ff3)
    y3 = jax.block_until_ready(ff_layer(x3, *p3))
    ref3 = _reference(x3, *p3)
    assert jnp.allclose(y3, ref3, atol=1e-3, rtol=1e-3), "f32 mismatch (test 3)"

    # 4) bf16 operand path (MXU-friendly), loose tolerance vs f32 reference
    xb = x.astype(jnp.bfloat16)
    pb = tuple(a.astype(jnp.bfloat16) for a in (w1, b1, w2, b2))
    yb = jax.block_until_ready(ff_layer(xb, *pb))
    refb = _reference(xb, *pb)
    assert jnp.allclose(yb.astype(jnp.float32), refb, atol=1e-1, rtol=1e-1), \
        "bf16 mismatch vs f32 reference"

    print("KERNEL_OK")
</pallas_src>

<mosaic_0001>
module attributes {stable_mosaic.version = 11 : i64} {
  func.func @_ff_kernel(%arg0: i32, %arg1: i32, %arg2: memref<16x128xf32, #tpu.memory_space<vmem>>, %arg3: memref<128x128xf32, #tpu.memory_space<vmem>>, %arg4: memref<128x128xf32, #tpu.memory_space<vmem>>, %arg5: memref<1x128xf32, #tpu.memory_space<vmem>>, %arg6: memref<16x128xf32, #tpu.memory_space<vmem>>, %arg7: memref<16x128xf32, #tpu.memory_space<vmem>>) attributes {dimension_semantics = [#tpu.dimension_semantics<parallel>, #tpu.dimension_semantics<arbitrary>], iteration_bounds = array<i64: 1, 1>, scalar_prefetch = 0 : i64, scratch_operands = 1 : i64, tpu.core_type = #tpu.core_type<tc>, window_params = [{transform_indices = @transform_0, window_bounds = array<i64: 16, 128>}, {transform_indices = @transform_1, window_bounds = array<i64: 128, 128>}, {transform_indices = @transform_2, window_bounds = array<i64: 128, 128>}, {pipeline_mode = #tpu.pipeline_mode<synchronous>, transform_indices = @transform_3, window_bounds = array<i64: 1, 128>}, {transform_indices = @transform_4, window_bounds = array<i64: 16, 128>}]} {
    %c0_i32 = arith.constant 0 : i32
    %0 = arith.cmpi eq, %arg1, %c0_i32 : i32
    %1 = arith.extui %0 : i1 to i32
    %c0_i32_0 = arith.constant 0 : i32
    %2 = arith.cmpi ne, %1, %c0_i32_0 : i32
    scf.if %2 {
      %c0_13 = arith.constant 0 : index
      %c0_14 = arith.constant 0 : index
      %14 = vector.load %arg5[%c0_13, %c0_14] : memref<1x128xf32, #tpu.memory_space<vmem>>, vector<1x128xf32>
      %15 = vector.shape_cast %14 : vector<1x128xf32> to vector<1x128xf32>
      %16 = vector.broadcast %15 : vector<1x128xf32> to vector<16x128xf32>
      %c0_15 = arith.constant 0 : index
      %c0_16 = arith.constant 0 : index
      %17 = vector.load %arg7[%c0_15, %c0_16] : memref<16x128xf32, #tpu.memory_space<vmem>>, vector<16x128xf32>
      tpu.vector_store %arg7[%c0_15, %c0_16], %16 {strides = array<i32>} : memref<16x128xf32, #tpu.memory_space<vmem>>, vector<16x128xf32>,
    } else {
    }
    %c0 = arith.constant 0 : index
    %c0_1 = arith.constant 0 : index
    %3 = vector.load %arg2[%c0, %c0_1] : memref<16x128xf32, #tpu.memory_space<vmem>>, vector<16x128xf32>
    %c0_2 = arith.constant 0 : index
    %c0_3 = arith.constant 0 : index
    %4 = vector.load %arg3[%c0_2, %c0_3] : memref<128x128xf32, #tpu.memory_space<vmem>>, vector<128x128xf32>
    %cst = arith.constant dense<0.000000e+00> : vector<16x128xf32>
    %5 = tpu.matmul %3, %4, %cst {dimension_numbers = #tpu.dot_dimension_numbers<[1], [0], [0], [1], [0, 0, 1, 1], [], []>} : vector<16x128xf32>, vector<128x128xf32>, vector<16x128xf32> -> vector<16x128xf32>
    %c0_4 = arith.constant 0 : index
    %c0_5 = arith.constant 0 : index
    %6 = vector.load %arg7[%c0_4, %c0_5] : memref<16x128xf32, #tpu.memory_space<vmem>>, vector<16x128xf32>
    %c0_6 = arith.constant 0 : index
    %c0_7 = arith.constant 0 : index
    %7 = vector.load %arg4[%c0_6, %c0_7] : memref<128x128xf32, #tpu.memory_space<vmem>>, vector<128x128xf32>
    %cst_8 = arith.constant dense<0.000000e+00> : vector<16x128xf32>
    %8 = tpu.matmul %5, %7, %cst_8 {dimension_numbers = #tpu.dot_dimension_numbers<[1], [0], [0], [1], [0, 0, 1, 1], [], []>} : vector<16x128xf32>, vector<128x128xf32>, vector<16x128xf32> -> vector<16x128xf32>
    %9 = arith.addf %6, %8 : vector<16x128xf32>
    %c0_9 = arith.constant 0 : index
    %c0_10 = arith.constant 0 : index
    %10 = vector.load %arg7[%c0_9, %c0_10] : memref<16x128xf32, #tpu.memory_space<vmem>>, vector<16x128xf32>
    tpu.vector_store %arg7[%c0_9, %c0_10], %9 {strides = array<i32>} : memref<16x128xf32, #tpu.memory_space<vmem>>, vector<16x128xf32>,
    %c0_i32_11 = arith.constant 0 : i32
    %11 = arith.cmpi eq, %arg1, %c0_i32_11 : i32
    %12 = arith.extui %11 : i1 to i32
    %c0_i32_12 = arith.constant 0 : i32
    %13 = arith.cmpi ne, %12, %c0_i32_12 : i32
    scf.if %13 {
      %c0_13 = arith.constant 0 : index
      %c0_14 = arith.constant 0 : index
      %14 = vector.load %arg7[%c0_13, %c0_14] : memref<16x128xf32, #tpu.memory_space<vmem>>, vector<16x128xf32>
      %c0_15 = arith.constant 0 : index
      %c0_16 = arith.constant 0 : index
      %15 = vector.load %arg6[%c0_15, %c0_16] : memref<16x128xf32, #tpu.memory_space<vmem>>, vector<16x128xf32>
      tpu.vector_store %arg6[%c0_15, %c0_16], %14 {strides = array<i32>} : memref<16x128xf32, #tpu.memory_space<vmem>>, vector<16x128xf32>,
    } else {
    }
    return
  }
  func.func @transform_0(%arg0: i32, %arg1: i32) -> (i32, i32) {
    %c0_i32 = arith.constant 0 : i32
    %c0_i32_0 = arith.constant 0 : i32
    return %arg0, %c0_i32 : i32, i32
  }
  func.func @transform_1(%arg0: i32, %arg1: i32) -> (i32, i32) {
    %c0_i32 = arith.constant 0 : i32
    %c0_i32_0 = arith.constant 0 : i32
    return %c0_i32, %arg1 : i32, i32
  }
  func.func @transform_2(%arg0: i32, %arg1: i32) -> (i32, i32) {
    %c0_i32 = arith.constant 0 : i32
    %c0_i32_0 = arith.constant 0 : i32
    return %arg1, %c0_i32 : i32, i32
  }
  func.func @transform_3(%arg0: i32, %arg1: i32) -> (i32, i32) {
    %c0_i32 = arith.constant 0 : i32
    %c0_i32_0 = arith.constant 0 : i32
    %c0_i32_1 = arith.constant 0 : i32
    return %c0_i32, %c0_i32_0 : i32, i32
  }
  func.func @transform_4(%arg0: i32, %arg1: i32) -> (i32, i32) {
    %c0_i32 = arith.constant 0 : i32
    %c0_i32_0 = arith.constant 0 : i32
    return %arg0, %c0_i32 : i32, i32
  }
}

</mosaic_0001>

<bundles_post_ra>
// kernel: ff_layer.1
= control target key start
LH: loop header
LB: loop body
LE: loop exit
PB: predicated region body
PF: predicated region fallthrough
CT: control target
= control target key end

     0   :  { %s293_s1 = inlined_call_operand.vmem [shape: f32[128,128], index: 1, kind: input, shape index: {}]   ;;  %s294_s2 = inlined_call_operand.vmem [shape: f32[128,128], index: 2, kind: input, shape index: {}]   ;;  %s295_s0 = inlined_call_operand.vmem [shape: f32[16,128], index: 0, kind: input, shape index: {}]   ;;  %s296_s3 = inlined_call_operand.vmem [shape: f32[1,128], index: 3, kind: input, shape index: {}]   ;;  %s297_s4 = inlined_call_operand.vmem [shape: f32[16,128], index: 4, kind: output, shape index: {}]  }
   0x1   :  { %v44_v0 = vld [vmem:[%s293_s1 + $0x78] sm:$0xff]  ;;  %v43_v1 = vld [vmem:[%s293_s1 + $0x70] sm:$0xff]  ;;  %v42_v2 = vld [vmem:[%s293_s1 + $0x68] sm:$0xff] }
   0x2   :  { %124 = vmatpush.msra.mxu2 %v44_v0  ;;  %45 = vmatpush.msra.mxu0 %v44_v0  ;;  %v41_v3 = vld [vmem:[%s293_s1 + $0x60] sm:$0xff]  ;;  %v40_v4 = vld [vmem:[%s293_s1 + $0x58] sm:$0xff]  ;;  %v84_v6 = vld [vmem:[%s294_s2 + $0x70] sm:$0xff] }
   0x3   :  { %v85_v5 = vld [vmem:[%s294_s2 + $0x78] sm:$0xff]  ;;  %v39_v7 = vld [vmem:[%s293_s1 + $0x50] sm:$0xff]  ;;  %v83_v8 = vld [vmem:[%s294_s2 + $0x68] sm:$0xff] }
   0x4   :  { %125 = vmatpush.msra.mxu2 %v43_v1  ;;  %46 = vmatpush.msra.mxu0 %v43_v1  ;;  %v38_v9 = vld [vmem:[%s293_s1 + $0x48] sm:$0xff]  ;;  %v82_v10 = vld [vmem:[%s294_s2 + $0x60] sm:$0xff]  ;;  %v81_v12 = vld [vmem:[%s294_s2 + $0x58] sm:$0xff] }
   0x5   :  { %140 = vmatpush.msra.mxu3 %v85_v5  ;;  %86 = vmatpush.msra.mxu1 %v85_v5  ;;  %v37_v11 = vld [vmem:[%s293_s1 + $0x40] sm:$0xff]  ;;  %v36_v13 = vld [vmem:[%s293_s1 + $0x38] sm:$0xff]  ;;  %v80_v14 = vld [vmem:[%s294_s2 + $0x50] sm:$0xff] }
   0x6   :  { %126 = vmatpush.msra.mxu2 %v42_v2  ;;  %47 = vmatpush.msra.mxu0 %v42_v2  ;;  %v35_v15 = vld [vmem:[%s293_s1 + $0x30] sm:$0xff]  ;;  %v79_v16 = vld [vmem:[%s294_s2 + $0x48] sm:$0xff]  ;;  %v78_v18 = vld [vmem:[%s294_s2 + $0x40] sm:$0xff] }
   0x7   :  { %141 = vmatpush.msra.mxu3 %v84_v6  ;;  %87 = vmatpush.msra.mxu1 %v84_v6  ;;  %v34_v17 = vld [vmem:[%s293_s1 + $0x28] sm:$0xff]  ;;  %v33_v19 = vld [vmem:[%s293_s1 + $0x20] sm:$0xff]  ;;  %v77_v20 = vld [vmem:[%s294_s2 + $0x38] sm:$0xff] }
   0x8   :  { %127 = vmatpush.msra.mxu2 %v41_v3  ;;  %48 = vmatpush.msra.mxu0 %v41_v3  ;;  %v32_v21 = vld [vmem:[%s293_s1 + $0x18] sm:$0xff]  ;;  %v76_v22 = vld [vmem:[%s294_s2 + $0x30] sm:$0xff]  ;;  %v75_v24 = vld [vmem:[%s294_s2 + $0x28] sm:$0xff] }
   0x9   :  { %142 = vmatpush.msra.mxu3 %v83_v8  ;;  %88 = vmatpush.msra.mxu1 %v83_v8  ;;  %v31_v23 = vld [vmem:[%s293_s1 + $0x10] sm:$0xff]  ;;  %v30_v25 = vld [vmem:[%s293_s1 + $0x8] sm:$0xff]  ;;  %v74_v26 = vld [vmem:[%s294_s2 + $0x20] sm:$0xff] }
   0xa   :  { %128 = vmatpush.msra.mxu2 %v40_v4  ;;  %49 = vmatpush.msra.mxu0 %v40_v4  ;;  %v29_v27 = vld [vmem:[%s293_s1] sm:$0xff]  ;;  %v28_v28 = vld [vmem:[%s295_s0 + $0x8] sm:$0xff]  ;;  %v73_v30 = vld [vmem:[%s294_s2 + $0x18] sm:$0xff] }
   0xb   :  { %143 = vmatpush.msra.mxu3 %v82_v10  ;;  %89 = vmatpush.msra.mxu1 %v82_v10  ;;  %v27_v29 = vld [vmem:[%s295_s0] sm:$0xff]  ;;  %v72_v31 = vld [vmem:[%s294_s2 + $0x10] sm:$0xff]  ;;  %v71_v32 = vld [vmem:[%s294_s2 + $0x8] sm:$0xff] }
   0xc   :  { %129 = vmatpush.msra.mxu2 %v39_v7  ;;  %50 = vmatpush.msra.mxu0 %v39_v7  ;;  %v70_v33 = vld [vmem:[%s294_s2] sm:$0xff] }
   0xd   :  { %144 = vmatpush.msra.mxu3 %v81_v12  ;;  %90 = vmatpush.msra.mxu1 %v81_v12  ;;  %v156_v36 = vld [vmem:[%s296_s3] ss:$0 sm:$0xff] }
   0xe   :  { %130 = vmatpush.msra.mxu2 %v38_v9  ;;  %51 = vmatpush.msra.mxu0 %v38_v9 }
   0xf   :  { %145 = vmatpush.msra.mxu3 %v80_v14  ;;  %91 = vmatpush.msra.mxu1 %v80_v14 }
  0x10   :  { %131 = vmatpush.msra.mxu2 %v37_v11  ;;  %52 = vmatpush.msra.mxu0 %v37_v11 }
  0x11   :  { %146 = vmatpush.msra.mxu3 %v79_v16  ;;  %92 = vmatpush.msra.mxu1 %v79_v16 }
  0x12   :  { %132 = vmatpush.msra.mxu2 %v36_v13  ;;  %53 = vmatpush.msra.mxu0 %v36_v13 }
  0x13   :  { %147 = vmatpush.msra.mxu3 %v78_v18  ;;  %93 = vmatpush.msra.mxu1 %v78_v18 }
  0x14   :  { %133 = vmatpush.msra.mxu2 %v35_v15  ;;  %54 = vmatpush.msra.mxu0 %v35_v15 }
  0x15   :  { %148 = vmatpush.msra.mxu3 %v77_v20  ;;  %94 = vmatpush.msra.mxu1 %v77_v20 }
  0x16   :  { %134 = vmatpush.msra.mxu2 %v34_v17  ;;  %55 = vmatpush.msra.mxu0 %v34_v17 }
  0x17   :  { %149 = vmatpush.msra.mxu3 %v76_v22  ;;  %95 = vmatpush.msra.mxu1 %v76_v22 }
  0x18   :  { %135 = vmatpush.msra.mxu2 %v33_v19  ;;  %56 = vmatpush.msra.mxu0 %v33_v19 }
  0x19   :  { %150 = vmatpush.msra.mxu3 %v75_v24  ;;  %96 = vmatpush.msra.mxu1 %v75_v24 }
  0x1a   :  { %136 = vmatpush.msra.mxu2 %v32_v21  ;;  %57 = vmatpush.msra.mxu0 %v32_v21 }
  0x1b   :  { %151 = vmatpush.msra.mxu3 %v74_v26  ;;  %97 = vmatpush.msra.mxu1 %v74_v26 }
  0x1c   :  { %137 = vmatpush.msra.mxu2 %v31_v23  ;;  %58 = vmatpush.msra.mxu0 %v31_v23 }
  0x1d   :  { %152 = vmatpush.msra.mxu3 %v73_v30  ;;  %98 = vmatpush.msra.mxu1 %v73_v30 }
  0x1e   :  { %138 = vmatpush.msra.mxu2 %v30_v25  ;;  %59 = vmatpush.msra.mxu0 %v30_v25 }
  0x1f   :  { %153 = vmatpush.msra.mxu3 %v72_v31  ;;  %99 = vmatpush.msra.mxu1 %v72_v31 }
  0x20   :  { %139 = vmatpush.msra.mxu2 %v29_v27  ;;  %60 = vmatpush.msra.mxu0 %v29_v27 }
  0x21   :  { %64 = vmatmul.f32.vlgmr.msra.gmra.mxu2 %v28_v28  ;;  %61 = vmatmul.f32.vlgmr.msra.gmra.mxu0 %v27_v29 }
  0x22   :  { %154 = vmatpush.msra.mxu3 %v71_v32  ;;  %100 = vmatpush.msra.mxu1 %v71_v32 }
  0x24   :  { %155 = vmatpush.msra.mxu3 %v70_v33  ;;  %101 = vmatpush.msra.mxu1 %v70_v33 }
  0x9e   :  { %v62_v34 = vpop.f32.mrf.mxu0 }
  0x9f   :  { %102 = vmatmul.f32.vlgmr.msra.gmra.mxu1 %v62_v34 }
  0xa4   :  { %v65_v35 = vpop.f32.mrf.mxu2 }
  0xa5   :  { %105 = vmatmul.f32.vlgmr.msra.gmra.mxu3 %v65_v35 }
 0x11c   :  { %v103_v37 = vpop.f32.mrf.mxu1 }
 0x11d   :  { %v109_v38 = vadd.f32 %v156_v36, %v103_v37 }
 0x11f   :  { %118 = vst [vmem:[%s297_s4] sm:$0xff] %v109_v38 }
 0x128   :  { %v106_v39 = vpop.f32.mrf.mxu3 }
 0x129   :  { %v110_v40 = vadd.f32 %v156_v36, %v106_v39 }
 0x12b   :  { %119 = vst [vmem:[%s297_s4 + $0x8] sm:$0xff] %v110_v40 }

</bundles_post_ra>
